<compile_context>
chip_gen: v7x
topology: tpu7x:2x2x1
jax: 0.10.0
libtpu: 0.0.40
codegen_flags: <defaults>
</compile_context>

<pallas_src>
import jax
import jax.numpy as jnp
import numpy as np
from jax.experimental import pallas as pl
from jax.experimental.pallas import tpu as pltpu


LANE = 128  # lane width of the streamed tiles (one full vreg row)


def _wblock_mix_kernel(x_ref, bd_ref, o_ref):
    """Pure streaming body: one MXU matmul per (batch, row-tile) grid step.

    x_ref  : (1, TILE_R, LANE)  tile of images viewed as (B, NR, LANE)
    bd_ref : (1, LANE, LANE)    per-batch block-diagonal lift of M (c x c)
    o_ref  : (1, TILE_R, LANE)  output tile (same flat layout as the input)
    """
    o_ref[0] = jnp.dot(
        x_ref[0], bd_ref[0], preferred_element_type=jnp.float32
    ).astype(o_ref.dtype)


def _pick_tile_rows(nr, batch, cap=4096):
    """Rows (of LANE lanes) per grid step.

    Big enough to amortize the ~0.35 us per-step overhead (up to ~2 MiB f32
    per buffer at cap=4096), small enough that double-buffered in+out stays
    far below the scoped-VMEM defaults on v5e/v6e/v7x, and split so that
    batch * num_tiles >= 2 whenever possible (v7x megacore has 2 TCs).
    """
    tile = min(nr, cap)
    if batch * pl.cdiv(nr, tile) < 2 and nr >= 16:
        tile = pl.cdiv(nr, 2)              # expose >= 2 parallel grid steps
    if tile < nr:
        tile = max(8, (tile // 8) * 8)     # sublane-aligned unless full dim
    return tile


def wblock_forward(images, wq, wk, wv, maxpool_kernel_size,
                   attention_scaling_factor, *, tile_rows_cap=4096):
    """images: (B, C, H, W) float32 NCHW.  wq/wk/wv: (c, c) nn.Linear weights
    in PyTorch (out_features, in_features) layout (NOT pre-transposed)."""
    B, C, H, W = images.shape
    c = C
    kk = maxpool_kernel_size
    assert H % kk == 0 and W % kk == 0, "maxpool requires H, W divisible by k"
    Hp, Wp = H // kk, W // kk

    total = C * H * W
    # TODO(synk): pad the flat image to a multiple of LANE (masked tail) for
    #             shapes where C*H*W is not 128-divisible; all realistic
    #             hformer configs (and this demo) satisfy it.
    assert total % LANE == 0 and LANE % c == 0, \
        "C*H*W must be divisible by 128 and 128 divisible by num_channels"
    NR = total // LANE

    hp = jax.lax.Precision.HIGHEST

    # ---- hoisted tiny attention (plain JAX prologue; only touches the
    #      pooled image, which is 1/k^2 of the stream) ----------------------
    pooled = jnp.max(images.reshape(B, C, Hp, kk, Wp, kk), axis=(3, 5))
    fp = pooled.reshape(B, -1, c)                                   # (B, Np, c)
    q = jnp.matmul(fp, wq.T, precision=hp)                          # (B, Np, c)
    k = jnp.matmul(fp, wk.T, precision=hp)                          # (B, Np, c)
    logits = jnp.einsum('bni,bnj->bij', q, k, precision=hp)         # (B, c, c)
    logits = logits / jnp.sqrt(jnp.float32(attention_scaling_factor))
    attn = jax.nn.softmax(logits, axis=-1)                          # (B, c, c)
    # out_flat = (ff @ Wv^T) @ A = ff @ (Wv^T @ A)  =>  M = Wv^T @ A
    m = jnp.einsum('di,bde->bie', wv, attn, precision=hp)           # (B, c, c)

    # Block-diagonal lift of M to the 128-lane width:
    #   BD[b, g*c+i, h*c+j] = (g == h) * M[b, i, j]
    eye = jnp.eye(LANE // c, dtype=m.dtype)
    bd = jnp.einsum('gh,bij->bgihj', eye, m).reshape(B, LANE, LANE)

    # ---- streaming Pallas kernel: out_row = x_row @ BD[b] -----------------
    x = images.reshape(B, NR, LANE)        # free reshape, no HBM traffic
    tile_r = _pick_tile_rows(NR, B, tile_rows_cap)
    nt = pl.cdiv(NR, tile_r)

    out = pl.pallas_call(
        _wblock_mix_kernel,
        out_shape=jax.ShapeDtypeStruct((B, NR, LANE), images.dtype),
        grid=(B, nt),
        in_specs=[
            pl.BlockSpec((1, tile_r, LANE), lambda b, t: (b, t, 0)),  # stream
            pl.BlockSpec((1, LANE, LANE), lambda b, t: (b, 0, 0)),    # BD[b]
        ],
        out_specs=pl.BlockSpec((1, tile_r, LANE), lambda b, t: (b, t, 0)),
        compiler_params=pltpu.CompilerParams(
            dimension_semantics=("parallel", "parallel")),
    )(x, bd)

    # Torch-style .view back to NCHW (free reshape).
    return out.reshape(B, C, H, W)


def wblock_reference(images, wq, wk, wv, maxpool_kernel_size,
                     attention_scaling_factor):
    """Pure-JAX reference mirroring the PyTorch forward exactly."""
    B, C, H, W = images.shape
    c = C
    kk = maxpool_kernel_size
    Hp, Wp = H // kk, W // kk
    hp = jax.lax.Precision.HIGHEST
    pooled = jnp.max(images.reshape(B, C, Hp, kk, Wp, kk), axis=(3, 5))
    fp = pooled.reshape(B, -1, c)
    q = jnp.matmul(fp, wq.T, precision=hp)
    q = jnp.transpose(q, (0, 2, 1))
    k = jnp.matmul(fp, wk.T, precision=hp)
    ff = images.reshape(B, -1, c)
    v = jnp.matmul(ff, wv.T, precision=hp)
    attn = jnp.matmul(q, k, precision=hp) / jnp.sqrt(
        jnp.float32(attention_scaling_factor))
    attn = jax.nn.softmax(attn, axis=-1)
    out = jnp.matmul(v, attn, precision=hp)
    return out.reshape(B, C, H, W)


if __name__ == "__main__":
    # Module hyper-params (small, consistent with the forward pass).
    maxpool_kernel_size = 2
    attention_scaling_factor = 4.0
    num_channels = 4
    height = width = 16
    batch = 2

    key = jax.random.PRNGKey(0)
    k_img, k_q, k_k, k_v = jax.random.split(key, 4)

    images = jax.random.normal(
        k_img, (batch, num_channels, height, width), dtype=jnp.float32)
    # nn.Linear(c, c, bias=False) weights, shape (out_features, in_features).
    wq = jax.random.normal(k_q, (num_channels, num_channels), jnp.float32) * 0.1
    wk = jax.random.normal(k_k, (num_channels, num_channels), jnp.float32) * 0.1
    wv = jax.random.normal(k_v, (num_channels, num_channels), jnp.float32) * 0.1

    out = jax.block_until_ready(
        wblock_forward(images, wq, wk, wv,
                       maxpool_kernel_size, attention_scaling_factor))
    ref = jax.block_until_ready(
        wblock_reference(images, wq, wk, wv,
                         maxpool_kernel_size, attention_scaling_factor))

    assert out.shape == (batch, num_channels, height, width)
    err = np.max(np.abs(np.asarray(out) - np.asarray(ref)))
    assert np.allclose(np.asarray(out), np.asarray(ref),
                       atol=1e-4, rtol=1e-4), f"max abs err {err}"

    print("KERNEL_OK")
</pallas_src>

<mosaic_0001>
module attributes {stable_mosaic.version = 11 : i64} {
  func.func @_wblock_mix_kernel(%arg0: i32, %arg1: i32, %arg2: memref<1x8x128xf32, #tpu.memory_space<vmem>>, %arg3: memref<1x128x128xf32, #tpu.memory_space<vmem>>, %arg4: memref<1x8x128xf32, #tpu.memory_space<vmem>>) attributes {dimension_semantics = [#tpu.dimension_semantics<parallel>, #tpu.dimension_semantics<parallel>], iteration_bounds = array<i64: 2, 1>, scalar_prefetch = 0 : i64, scratch_operands = 0 : i64, tpu.core_type = #tpu.core_type<tc>, window_params = [{transform_indices = @transform_0, window_bounds = array<i64: 1, 8, 128>}, {transform_indices = @transform_1, window_bounds = array<i64: 1, 128, 128>}, {transform_indices = @transform_2, window_bounds = array<i64: 1, 8, 128>}]} {
    %c0 = arith.constant 0 : index
    %c0_0 = arith.constant 0 : index
    %c0_1 = arith.constant 0 : index
    %0 = vector.load %arg2[%c0, %c0_0, %c0_1] : memref<1x8x128xf32, #tpu.memory_space<vmem>>, vector<1x8x128xf32>
    %1 = vector.shape_cast %0 : vector<1x8x128xf32> to vector<8x128xf32>
    %c0_2 = arith.constant 0 : index
    %c0_3 = arith.constant 0 : index
    %c0_4 = arith.constant 0 : index
    %2 = vector.load %arg3[%c0_2, %c0_3, %c0_4] : memref<1x128x128xf32, #tpu.memory_space<vmem>>, vector<1x128x128xf32>
    %3 = vector.shape_cast %2 : vector<1x128x128xf32> to vector<128x128xf32>
    %cst = arith.constant dense<0.000000e+00> : vector<8x128xf32>
    %4 = tpu.matmul %1, %3, %cst {dimension_numbers = #tpu.dot_dimension_numbers<[1], [0], [0], [1], [0, 0, 1, 1], [], []>} : vector<8x128xf32>, vector<128x128xf32>, vector<8x128xf32> -> vector<8x128xf32>
    %c0_5 = arith.constant 0 : index
    %c0_6 = arith.constant 0 : index
    %c0_7 = arith.constant 0 : index
    %5 = vector.load %arg4[%c0_5, %c0_6, %c0_7] : memref<1x8x128xf32, #tpu.memory_space<vmem>>, vector<1x8x128xf32>
    %6 = vector.shape_cast %5 : vector<1x8x128xf32> to vector<8x128xf32>
    %7 = vector.shape_cast %4 : vector<8x128xf32> to vector<1x8x128xf32>
    tpu.vector_store %arg4[%c0_5, %c0_6, %c0_7], %7 {strides = array<i32>} : memref<1x8x128xf32, #tpu.memory_space<vmem>>, vector<1x8x128xf32>,
    return
  }
  func.func @transform_0(%arg0: i32, %arg1: i32) -> (i32, i32, i32) {
    %c0_i32 = arith.constant 0 : i32
    %c0_i32_0 = arith.constant 0 : i32
    return %arg0, %arg1, %c0_i32 : i32, i32, i32
  }
  func.func @transform_1(%arg0: i32, %arg1: i32) -> (i32, i32, i32) {
    %c0_i32 = arith.constant 0 : i32
    %c0_i32_0 = arith.constant 0 : i32
    %c0_i32_1 = arith.constant 0 : i32
    return %arg0, %c0_i32, %c0_i32_0 : i32, i32, i32
  }
  func.func @transform_2(%arg0: i32, %arg1: i32) -> (i32, i32, i32) {
    %c0_i32 = arith.constant 0 : i32
    %c0_i32_0 = arith.constant 0 : i32
    return %arg0, %arg1, %c0_i32 : i32, i32, i32
  }
}

</mosaic_0001>

<bundles_post_ra>
// kernel: tpu_custom_call.1
= control target key start
LH: loop header
LB: loop body
LE: loop exit
PB: predicated region body
PF: predicated region fallthrough
CT: control target
= control target key end

     0   :  { %7 = vsyncpa [#allocation3], 0  ;;  %s1007_s0 = inlined_call_operand.hbm [shape: f32[2,8,128], index: 0, kind: input, shape index: {}]   ;;  %s1008_s1 = inlined_call_operand.hbm [shape: f32[2,128,128], index: 1, kind: input, shape index: {}]   ;;  %s1009_s2 = inlined_call_operand.hbm [shape: f32[2,8,128], index: 2, kind: output, shape index: {}]  }
   0x1   :  { %9 = vsyncpa [#allocation3 + $0x1], 0 }
   0x2   :  { %10 = vsyncpa [#allocation6], 0 }
   0x3   :  { %12 = vsyncpa [#allocation6 + $0x1], 0 }
   0x4   :  { %13 = vsyncpa [#allocation4], 0 }
   0x5   :  { %15 = vsyncpa [#allocation4 + $0x1], 0  ;;  %s759_s9 = smov 0   ;;  %s761_s10 = smov 0  }
   0x6   :  { %s763_s11 = smov 0   ;;  %s765_s12 = smov 0  }
   0x7   :  { %s767_s13 = smov 0   ;;  %s769_s14 = smov 0  }
   0x8 LB: > { %s422_s15 = sadd.s32 4294967295, %s734_s14   ;;  %s423_s16 = sadd.s32 4294967294, %s734_s14   ;;  %s734_s14 = sphi %s769_s14, %s21_s14   ;;  %s730_s13 = sphi %s767_s13, %s1028_s13   ;;  %s726_s12 = sphi %s765_s12, %s1027_s12   ;;  %s722_s11 = sphi %s763_s11, %s1026_s11   ;;  %s718_s10 = sphi %s761_s10, %s1025_s10   ;;  %s714_s9 = sphi %s759_s9, %s1024_s9  }
   0x9   : > { %s33_s17 = sadd.s32 1, %s730_s13  ;;  %s42_s18 = sadd.s32 1, %s722_s11 }
   0xa   : > { %p35_p0 = scmp.ge.s32.totalorder %s33_s17, 2  ;;  %p49_p1 = scmp.ne.s32.totalorder %s722_s11, %s718_s10 }
   0xb   : > { %p50_p2 = scmp.eq.s32.totalorder %s734_s14, 0  ;;  %p55_p3 = scmp.ne.s32.totalorder %s718_s10, %s714_s9 }
   0xc   : > { %s1030_s17 = smov (%p35_p0, %s33_s17), 0  ;;  %p56_p5 = scmp.eq.s32.totalorder %s422_s15, 0 }
   0xd   : > { %p800_p4 = por %p50_p2, %p49_p1  ;;  %s37_s20 = ssub.s32 %s730_s13, %s1030_s17 }
   0xe   : > { %p107_p6 = scmp.eq.s32.totalorder %s422_s15, 1  ;;  %p40_p7 = scmp.eq.s32.totalorder %s37_s20, 0 }
   0xf   : > { %p806_p8 = por %p56_p5, %p55_p3  ;;  %p113_p10 = scmp.eq.s32.totalorder %s423_s16, 1 }
  0x10   : > { %p810_p9 = por %p107_p6, %p49_p1  ;;  %p533_p13 = scmp.lt.s32.totalorder %s734_s14, 2 }
  0x11   : > { %s1013_s21 = scalar_select %p806_p8, 1, 0 }
  0x12   : > { %s1014_s22 = scalar_select %p810_p9, 1, 0 }
  0x13   : > { %s815_s23 = scalar_select %p40_p7, %s722_s11, %s42_s18  }
  0x14   : > { %p817_p11 = por %p113_p10, %p55_p3  ;;  %s824_s25 = sand.u32 1, %s722_s11  }
  0x15   : > { %s426_s26 = sshll.u32 %s824_s25, 3  ;;  %s427_s27 = sshll.u32 %s730_s13, 7 }
  0x16   : > { %s1015_s24 = scalar_select %p817_p11, 1, 0 }
  0x17   : > { %s831_s30 = scalar_lea.hbm %s1007_s0, %s427_s27  ;;  %s137_s3 = scalar_lea.vmem [#allocation2], %s426_s26 }
  0x18   : > { %s145_s4 = sshll.u32 %s137_s3, 4  ;;  %p837_p0 = pnand %p533_p13, %p800_p4  ;;  %s833_s4 = int_to_ptr.vmem [resolvable:$true] %s145_s4 }
  0x19   : > { %s134_s6 = scalar_lea.sflag [#allocation3], %s824_s25  ;;  %s588_s7 = scalar_lea.hbm %s831_s30, 128 }
  0x1a   : > { %p589_p3 = scmp.ne.s32.totalorder %s831_s30, %s588_s7  ;;  %p590_p5 = pneg %p837_p0 }
  0x1b   : > { %s593_s16 = scalar_lea.hbm %s1007_s0, 256  ;;  %p594_p4 = scmp.lt.u32.totalorder %s831_s30, %s1007_s0 }
  0x1c   : > { %p591_p6 = pnand %p590_p5, %p589_p3  ;;  %p595_p10 = scmp.lt.u32.totalorder %s593_s16, %s588_s7 }
  0x1d   : > { %p597_p12 = scmp.lt.u32.totalorder %s588_s7, %s831_s30 }
  0x1e   : > { %p592_p7 = pneg %p591_p6  ;;  %p596_p13 = por %p595_p10, %p594_p4 }
  0x20   : > { %p598_p1 = por %p597_p12, %p596_p13 }
  0x22   : > { %p599_p2 = pnand %p598_p1, %p592_p7 }
  0x24   : > { %602 = shalt.err (!%p599_p2)
}
  0x25   : > { %s603_s20 = scalar_lea.vmem %s833_s4, 128  ;;  %s736_s26 = smov [#allocation2]  }
  0x26   : > { %p604_p3 = scmp.ne.s32.totalorder %s833_s4, %s603_s20  ;;  %s608_s27 = sshll.u32 %s736_s26, 4  ;;  %s609_s27 = int_to_ptr.vmem [resolvable:$false] %s608_s27 }
  0x27   : > { %s610_s28 = scalar_lea.vmem %s609_s27, 256  ;;  %p611_p9 = scmp.lt.s32.totalorder %s833_s4, %s609_s27 }
  0x28   : > { %p606_p6 = pnand %p604_p3, %p590_p5  ;;  %p612_p4 = scmp.lt.s32.totalorder %s610_s28, %s603_s20 }
  0x2a   : > { %p607_p11 = pneg %p606_p6  ;;  %p613_p10 = por %p612_p4, %p611_p9 }
  0x2c   : > { %p614_p12 = pnand %p613_p10, %p607_p11 }
  0x2e   : > { %617 = shalt.err (!%p614_p12)
}
  0x2f   : > { %525 = dma.hbm_to_vmem [thread:$0]  (!%p837_p0), %s831_s30, 128, %s833_s4, %s134_s6  }
  0x30   : > { %p1017_p1 = scmp.lt.s32.totalorder %s734_s14, 3  ;;  %p1018_p2 = scmp.ge.s32.totalorder %s734_s14, 1 }
  0x31   : > { %s428_s3 = sshll.u32 %s824_s25, 7  ;;  %s439_s7 = sshll.u32 %s730_s13, 11 }
  0x32   : > { %p873_p7 = pnand %p1018_p2, %p1017_p1  ;;  %s882_s16 = scalar_lea.hbm %s1008_s1, %s439_s7 }
  0x33   : > { %s156_s18 = scalar_lea.vmem [#allocation5], %s428_s3  ;;  %s153_s30 = scalar_lea.sflag [#allocation6], %s824_s25 }
  0x34   : > { %s163_s19 = sshll.u32 %s156_s18, 4  ;;  %s618_s4 = scalar_lea.hbm %s882_s16, 2048  ;;  %s884_s19 = int_to_ptr.vmem [resolvable:$true] %s163_s19 }
  0x35   : > { %p619_p9 = scmp.ne.s32.totalorder %s882_s16, %s618_s4  ;;  %s623_s26 = scalar_lea.hbm %s1008_s1, 4096 }
  0x36   : > { %p624_p3 = scmp.lt.u32.totalorder %s882_s16, %s1008_s1  ;;  %p625_p6 = scmp.lt.u32.totalorder %s623_s26, %s618_s4 }
  0x37   : > { %p621_p11 = pnand %p619_p9, %p590_p5  ;;  %p627_p10 = scmp.lt.u32.totalorder %s618_s4, %s882_s16 }
  0x38   : > { %p626_p4 = por %p625_p6, %p624_p3 }
  0x39   : > { %p622_p13 = pneg %p621_p11 }
  0x3a   : > { %p628_p12 = por %p627_p10, %p626_p4 }
  0x3c   : > { %p629_p1 = pnand %p628_p12, %p622_p13 }
  0x3e   : > { %632 = shalt.err (!%p629_p1)
}
  0x3f   : > { %s633_s3 = scalar_lea.vmem %s884_s19, 2048  ;;  %s737_s7 = smov [#allocation5]  }
  0x40   : > { %p634_p2 = scmp.ne.s32.totalorder %s884_s19, %s633_s3  ;;  %s638_s8 = sshll.u32 %s737_s7, 4  ;;  %s639_s8 = int_to_ptr.vmem [resolvable:$false] %s638_s8 }
  0x41   : > { %s640_s15 = scalar_lea.vmem %s639_s8, 4096  ;;  %p641_p8 = scmp.lt.s32.totalorder %s884_s19, %s639_s8 }
  0x42   : > { %p636_p9 = pnand %p634_p2, %p590_p5  ;;  %p642_p3 = scmp.lt.s32.totalorder %s640_s15, %s633_s3 }
  0x44   : > { %p637_p11 = pneg %p636_p9  ;;  %p643_p6 = por %p642_p3, %p641_p8 }
  0x46   : > { %p644_p4 = pnand %p643_p6, %p637_p11 }
  0x48   : > { %647 = shalt.err (!%p644_p4)
}
  0x49   : > { %s738_s18 = smov 128   ;;  %s739_s4 = smov 8  }
  0x4a   : > { %528 = dma.hbm_to_vmem [thread:$0]  (!%p837_p0), %s882_s16, 2048, %s884_s19, %s153_s30, %s738_s18, %s738_s18, %s739_s4  }
  0x4b   : > { %175 = sbr.rel (%p873_p7) target bundleno = 346 (0x15a), region = 28  ;;  %s915_s6 = sand.u32 (!%p873_p7), 1, %s718_s10  }
  0x4c   : > { %s432_s20 = sshll.u32 (!%p873_p7), %s915_s6, 3  ;;  %s178_s26 = scalar_lea.sflag (!%p873_p7), [#allocation3], %s915_s6 }
  0x4d   : > { %s921_s27 = scalar_lea.vmem (!%p873_p7), [#allocation2], %s432_s20  ;;  %p1020_p8 = scmp.ne.s32.totalorder (!%p873_p7), %s1013_s21, 0 }
  0x52   : > { %701 = dma.done.wait (%p1020_p8), %s178_s26, 128  }
  0x53   : > { %703 = vsyncadd (%p1020_p8), %s178_s26, 4294967168  ;;  %s433_s25 = sshll.u32 %s915_s6, 7  ;;  %s187_s5 = scalar_lea.sflag [#allocation6], %s915_s6 }
  0x54   : > { %s929_s29 = scalar_lea.vmem [#allocation5], %s433_s25 }
  0x55   : > { %705 = dma.done.wait (%p1020_p8), %s187_s5, 2048  }
  0x56   : > { %707 = vsyncadd (%p1020_p8), %s187_s5, 4294965248  ;;  %v740_v0 = vmov 0.0|0.0   ;;  %vm741_vm0 = vmmov 0   ;;  %v742_v1 = vmov 0.0   ;;  %v217_v2 = vld [vmem:[%s929_s29] sm:$0xff]  ;;  %v218_v3 = vld [vmem:[%s929_s29 + $0x8] sm:$0xff] }
  0x57   : > { %492 = vmatprep.subr.bf16.mxu0 %v740_v0  ;;  %489 = vmatprep.mubr.msk.f32.mxu0 %vm741_vm0, %v742_v1  ;;  %v219_v4 = vld [vmem:[%s929_s29 + $0x10] sm:$0xff]  ;;  %v493_v5 = vpack.c.bf16 %v218_v3, %v217_v2  ;;  %v220_v6 = vld [vmem:[%s929_s29 + $0x18] sm:$0xff]  ;;  %v221_v8 = vld [vmem:[%s929_s29 + $0x20] sm:$0xff]  ;;  %s215_s21 = scalar_lea.vmem [#allocation7], %s432_s20  ;;  %s436_s19 = sshll.u32 %s726_s12, 7 }
  0x58   : > { %v496_v7 = vpack.c.bf16 %v220_v6, %v219_v4  ;;  %v222_v9 = vld [vmem:[%s929_s29 + $0x28] sm:$0xff]  ;;  %v223_v11 = vld [vmem:[%s929_s29 + $0x30] sm:$0xff]  ;;  %v224_v12 = vld [vmem:[%s929_s29 + $0x38] sm:$0xff]  ;;  %s319_s16 = sshll.u32 %s215_s21, 4  ;;  %s960_s3 = scalar_lea.hbm %s1009_s2, %s436_s19  ;;  %s955_s16 = int_to_ptr.vmem [resolvable:$true] %s319_s16 }
  0x59   : > { %494 = vmatpush3.bf16.msra.mxu0 %v493_v5  ;;  %v499_v10 = vpack.c.bf16 %v222_v9, %v221_v8  ;;  %v502_v13 = vpack.c.bf16 %v224_v12, %v223_v11  ;;  %v225_v14 = vld [vmem:[%s929_s29 + $0x40] sm:$0xff]  ;;  %v226_v15 = vld [vmem:[%s929_s29 + $0x48] sm:$0xff]  ;;  %v227_v17 = vld [vmem:[%s929_s29 + $0x50] sm:$0xff]  ;;  %s305_s7 = scalar_lea.sflag [#allocation4], %s915_s6  ;;  %s648_s8 = scalar_lea.vmem %s955_s16, 128 }
  0x5a   : > { %495 = vmatprep.subr.bf16.mxu0 %v740_v0  ;;  %v505_v16 = vpack.c.bf16 %v226_v15, %v225_v14  ;;  %v228_v18 = vld [vmem:[%s929_s29 + $0x58] sm:$0xff]  ;;  %v229_v20 = vld [vmem:[%s929_s29 + $0x60] sm:$0xff]  ;;  %v230_v21 = vld [vmem:[%s929_s29 + $0x68] sm:$0xff]  ;;  %p649_p0 = scmp.ne.s32.totalorder %s955_s16, %s648_s8  ;;  %p1021_p5 = scmp.ne.s32.totalorder %s1014_s22, 0 }
  0x5b   : > { %v508_v19 = vpack.c.bf16 %v228_v18, %v227_v17  ;;  %v511_v22 = vpack.c.bf16 %v230_v21, %v229_v20  ;;  %v231_v23 = vld [vmem:[%s929_s29 + $0x70] sm:$0xff]  ;;  %v232_v24 = vld [vmem:[%s929_s29 + $0x78] sm:$0xff]  ;;  %s743_s12 = smov [#allocation7]  }
  0x5c   : > { %v514_v25 = vpack.c.bf16 %v232_v24, %v231_v23  ;;  %v216_v26 = vld [vmem:[%s921_s27] sm:$0xff]  ;;  %p650_p7 = pnand %p649_p0, %p1021_p5  ;;  %s652_s15 = sshll.u32 %s743_s12, 4  ;;  %s653_s15 = int_to_ptr.vmem [resolvable:$false] %s652_s15 }
  0x5d   : > { %497 = vmatpush3.bf16.msra.mxu0 %v496_v7  ;;  %s654_s18 = scalar_lea.vmem %s653_s15, 256  ;;  %p655_p10 = scmp.lt.s32.totalorder %s955_s16, %s653_s15 }
  0x5e   : > { %498 = vmatprep.subr.bf16.mxu0 %v740_v0  ;;  %p651_p13 = pneg %p650_p7  ;;  %p656_p12 = scmp.lt.s32.totalorder %s654_s18, %s648_s8 }
  0x60   : > { %p657_p1 = por %p656_p12, %p655_p10 }
  0x61   : > { %500 = vmatpush3.bf16.msra.mxu0 %v499_v10 }
  0x62   : > { %501 = vmatprep.subr.bf16.mxu0 %v740_v0  ;;  %p658_p2 = pnand %p657_p1, %p651_p13 }
  0x65   : > { %503 = vmatpush3.bf16.msra.mxu0 %v502_v13 }
  0x66   : > { %504 = vmatprep.subr.bf16.mxu0 %v740_v0 }
  0x69   : > { %506 = vmatpush3.bf16.msra.mxu0 %v505_v16 }
  0x6a   : > { %507 = vmatprep.subr.bf16.mxu0 %v740_v0 }
  0x6d   : > { %509 = vmatpush3.bf16.msra.mxu0 %v508_v19 }
  0x6e   : > { %510 = vmatprep.subr.bf16.mxu0 %v740_v0 }
  0x71   : > { %512 = vmatpush3.bf16.msra.mxu0 %v511_v22 }
  0x72   : > { %513 = vmatprep.subr.bf16.mxu0 %v740_v0 }
  0x75   : > { %515 = vmatpush3.bf16.msra.mxu0 %v514_v25 }
  0x78   : > { %490 = vmatmul.mubr.f32.vlgmr.msra.gmra.mrb[0].mxu0 %v216_v26 }
 0x14b   : > { %v299_v27 = vpop.f32.mrb[0].mxu0 }
 0x14c   : > { %303 = vst [vmem:[%s215_s21] sm:$0xff] %v299_v27  ;;  %v491_v28 = vpop.f32.mrb[1].mxu0 }
 0x14d   : > { %661 = shalt.err (!%p658_p2)
}
 0x14e   : > { %s662_s4 = scalar_lea.hbm %s960_s3, 128  ;;  %s666_s26 = scalar_lea.hbm %s1009_s2, 256 }
 0x14f   : > { %p663_p9 = scmp.ne.s32.totalorder %s960_s3, %s662_s4  ;;  %p667_p6 = scmp.lt.u32.totalorder %s960_s3, %s1009_s2 }
 0x150   : > { %p668_p4 = scmp.lt.u32.totalorder %s666_s26, %s662_s4  ;;  %p670_p0 = scmp.lt.u32.totalorder %s662_s4, %s960_s3 }
 0x151   : > { %p664_p11 = pnand %p663_p9, %p1021_p5 }
 0x152   : > { %p669_p8 = por %p668_p4, %p667_p6 }
 0x153   : > { %p665_p3 = pneg %p664_p11 }
 0x154   : > { %p671_p7 = por %p670_p0, %p669_p8 }
 0x156   : > { %p672_p13 = pnand %p671_p7, %p665_p3 }
 0x158   : > { %675 = shalt.err (!%p672_p13)
}
 0x159   : > { %520 = dma.vmem_to_hbm [thread:$0]  (%p1021_p5), %s955_s16, 128, %s960_s3, %s305_s7  }
 0x15a PF: > { %s331_s5 = sand.u32 1, %s714_s9   ;;  %p1022_p10 = scmp.ne.s32.totalorder %s1015_s24, 0 }
 0x15b   : > { %p1023_p12 = scmp.ge.s32.totalorder %s734_s14, 2  ;;  %s332_s29 = scalar_lea.sflag [#allocation4], %s331_s5 }
 0x15d   : > { %p530_p1 = pnand %p1023_p12, %p1022_p10 }
 0x15f   : > { %709 = dma.done.wait (!%p530_p1), %s332_s29, 128  }
 0x160   : > { %711 = vsyncadd (!%p530_p1), %s332_s29, 4294967168  ;;  %s21_s14 = sadd.s32 1, %s734_s14   ;;  %s1024_s9 = smov %s718_s10 }
 0x161   : > { %p18_p2 = scmp.ge.s32.totalorder %s21_s14, 4   ;;  %s1025_s10 = smov %s722_s11 }
 0x162   : > { %s1026_s11 = smov %s815_s23  ;;  %s1027_s12 = smov %s730_s13 }
 0x163   : > { %s1028_s13 = smov %s1030_s17  ;;  %20 = sbr.rel (!%p18_p2) target bundleno = 8 (0x8), region = 86 }
 0x16a   :  { %337 = vsyncpa [#allocation3], 1 }
 0x16b   :  { %339 = vsyncpa [#allocation3 + $0x1], 1 }
 0x16c   :  { %340 = vsyncpa [#allocation6], 1 }
 0x16d   :  { %342 = vsyncpa [#allocation6 + $0x1], 1 }
 0x16e   :  { %343 = vsyncpa [#allocation4], 1 }
 0x16f   :  { %345 = vsyncpa [#allocation4 + $0x1], 1 }

</bundles_post_ra>
